<compile_context>
chip_gen: v5e
topology: v5e:2x2
jax: 0.10.0
libtpu: 0.0.40
codegen_flags: <defaults>
</compile_context>

<pallas_src>
import math

import jax
import jax.numpy as jnp
from jax.experimental import pallas as pl
from jax.experimental.pallas import tpu as pltpu

MIN_EXP = -6.0
MAX_EXP = 5.0

# Folded constants (computed at import time, become literals in the kernel).
_C = 10.0 ** ((MIN_EXP + MAX_EXP) / 2.0)                 # 10**(-0.5)
_D = 0.5 * math.log(10.0) * (MAX_EXP - MIN_EXP)          # 0.5*ln(10)*11


def compute_damping(c: jax.Array) -> jax.Array:
    """Pure elementwise body: 10**(MIN + sigmoid(c)*(MAX-MIN)), folded form.

    Usable both inside this kernel and as a prologue inside a consuming
    Pallas kernel (2 EUP ops + 2 VPU muls — free under MXU/DMA-bound work).
    """
    c = c.astype(jnp.float32)                            # no-op if already f32
    t = jnp.tanh(jnp.float32(0.5) * c)                   # EUP tanh
    return jnp.float32(_C) * jnp.exp(jnp.float32(_D) * t)  # EUP exp


def _damping_kernel(const_ref, out_ref):
    out_ref[...] = compute_damping(const_ref[...])


def damping_net_forward(const: jax.Array) -> jax.Array:
    """Pallas implementation of DampingNet.forward().

    const: (num_params,) parameter vector (any float dtype; cast in-kernel).
    returns lambda_: (num_params,) float32 == 10 ** (-6 + sigmoid(const) * 11).
    """
    num_params = const.shape[0]

    # Lane-dense layout when it divides cleanly (unmasked vst at large N);
    # otherwise a (1, N) full-array view (no (8,128) constraint, no padding
    # ops added around the call for tiny N).
    if num_params >= 128 and num_params % 128 == 0:
        view_shape = (num_params // 128, 128)
    else:
        view_shape = (1, num_params)
    const2d = const.reshape(view_shape)

    n = num_params
    out2d = pl.pallas_call(
        _damping_kernel,
        out_shape=jax.ShapeDtypeStruct(view_shape, jnp.float32),
        in_specs=[pl.BlockSpec(memory_space=pltpu.MemorySpace.VMEM)],
        out_specs=pl.BlockSpec(memory_space=pltpu.MemorySpace.VMEM),
        cost_estimate=pl.CostEstimate(
            flops=4 * n, transcendentals=2 * n, bytes_accessed=8 * n
        ),
        compiler_params=pltpu.CompilerParams(vmem_limit_bytes=1 << 20),
    )(const2d)
    return out2d.reshape(num_params)


def damping_net_reference(const: jax.Array) -> jax.Array:
    sig = jax.nn.sigmoid(const.astype(jnp.float32))
    return 10.0 ** (MIN_EXP + sig * (MAX_EXP - MIN_EXP))


if __name__ == "__main__":
    num_params = 2
    # Module __init__ registers const = zeros(num_params). Also perturb it
    # deterministically with PRNGKey(0) to exercise a non-trivial sigmoid.
    key = jax.random.PRNGKey(0)
    const_init = jnp.zeros((num_params,), dtype=jnp.float32)
    const_perturbed = const_init + 0.5 * jax.random.normal(
        key, (num_params,), dtype=jnp.float32
    )

    for const in (const_init, const_perturbed):
        out = damping_net_forward(const)
        out = jax.block_until_ready(out)
        ref = damping_net_reference(const)
        assert out.shape == (num_params,)
        # Slightly loose rtol to absorb EUP tanh/exp polynomial vs. XLA pow
        # lowering differences across TPU generations.
        assert jnp.allclose(out, ref, rtol=2e-5, atol=1e-6), (out, ref)

    print("KERNEL_OK")
</pallas_src>

<mosaic_0001>
module attributes {stable_mosaic.version = 11 : i64} {
  func.func @_damping_kernel(%arg0: memref<1x2xf32, #tpu.memory_space<vmem>>, %arg1: memref<1x2xf32, #tpu.memory_space<vmem>>) attributes {dimension_semantics = [], scalar_prefetch = 0 : i64, scratch_operands = 0 : i64, tpu.core_type = #tpu.core_type<tc>} {
    %c0 = arith.constant 0 : index
    %c0_0 = arith.constant 0 : index
    %0 = vector.load %arg0[%c0, %c0_0] : memref<1x2xf32, #tpu.memory_space<vmem>>, vector<1x2xf32>
    %cst = arith.constant 5.000000e-01 : f32
    %1 = vector.broadcast %cst : f32 to vector<1x2xf32>
    %2 = arith.mulf %1, %0 : vector<1x2xf32>
    %3 = math.tanh %2 : vector<1x2xf32>
    %cst_1 = arith.constant 12.6642179 : f32
    %4 = vector.broadcast %cst_1 : f32 to vector<1x2xf32>
    %5 = arith.mulf %4, %3 : vector<1x2xf32>
    %6 = math.exp %5 : vector<1x2xf32>
    %cst_2 = arith.constant 0.316227764 : f32
    %7 = vector.broadcast %cst_2 : f32 to vector<1x2xf32>
    %8 = arith.mulf %7, %6 : vector<1x2xf32>
    %c0_3 = arith.constant 0 : index
    %c0_4 = arith.constant 0 : index
    %9 = vector.load %arg1[%c0_3, %c0_4] : memref<1x2xf32, #tpu.memory_space<vmem>>, vector<1x2xf32>
    tpu.vector_store %arg1[%c0_3, %c0_4], %8 {strides = array<i32>} : memref<1x2xf32, #tpu.memory_space<vmem>>, vector<1x2xf32>,
    return
  }
}

</mosaic_0001>

<bundles_post_ra>
// kernel: tpu_custom_call.1
= control target key start
LH: loop header
LB: loop body
LE: loop exit
PB: predicated region body
PF: predicated region fallthrough
CT: control target
= control target key end

     0   :  { %6 = vsyncpa [#allocation3], 0  ;;  %s125_s0 = inlined_call_operand.hbm [shape: f32[1,2], index: 0, kind: input, shape index: {}]   ;;  %s126_s1 = inlined_call_operand.hbm [shape: f32[1,2], index: 1, kind: output, shape index: {}]  }
   0x1   :  { %7 = vsyncpa [#allocation4], 0  ;;  %s13_s8 = sshll.u32 %s125_s0, 4  ;;  %s107_s9 = smov [#allocation2]   ;;  %s14_s8 = int_to_ptr.hbm [resolvable:$true] %s13_s8 }
   0x2   :  { %s15_s10 = sshll.u32 %s107_s9, 4  ;;  %s16_s10 = int_to_ptr.vmem [resolvable:$true] %s15_s10 }
   0x3   :  { %18 = dma.hbm_to_vmem [thread:$0]  %s14_s8, 16, %s16_s10, [#allocation3]  }
   0x4   :  { %103 = dma.done.wait [#allocation3], 16  }
   0x5   :  { %104 = vsyncadd [#allocation3], 4294967280  ;;  %v23_v0 = vld [vmem:[#allocation2] sm:$0x1]  ;;  %s108_s11 = smov [#allocation5]   ;;  %s39_s0 = sshll.u32 %s126_s1, 4  ;;  %s40_s0 = int_to_ptr.hbm [resolvable:$true] %s39_s0 }
   0x6   :  { %v24_v1 = vmul.f32 0.5, %v23_v0  ;;  %s37_s12 = sshll.u32 %s108_s11, 4  ;;  %vm30_vm0 = vcmask 8192   ;;  %s38_s12 = int_to_ptr.vmem [resolvable:$true] %s37_s12 }
   0x8   :  { %51 = vtanh.f32 %v24_v1 }
   0xe   :  { %v52_v2 = vpop.eup %51 }
   0xf   :  { %v26_v3 = vmul.f32 12.664218, %v52_v2 }
  0x11   :  { %v27_v4 = vmul.f32 1.442695, %v26_v3 }
  0x13   :  { %53 = vpow2.f32 %v27_v4 }
  0x19   :  { %v54_v5 = vpop.eup %53 }
  0x1a   :  { %v29_v6 = vmul.f32 0.31622776, %v54_v5 }
  0x1c   :  { %31 = vst.msk [vmem:[#allocation5] sm:$0x1] %vm30_vm0, %v29_v6 }
  0x1d   :  { %42 = dma.vmem_to_hbm [thread:$0]  %s38_s12, 16, %s40_s0, [#allocation4]  }
  0x1e   :  { %105 = dma.done.wait [#allocation4], 16  }
  0x1f   :  { %106 = vsyncadd [#allocation4], 4294967280 }
  0x20   :  { %47 = vsyncpa [#allocation3], 1 }
  0x21   :  { %48 = vsyncpa [#allocation4], 1 }

</bundles_post_ra>
